<compile_context>
chip_gen: v5e
topology: v5e:2x2
jax: 0.10.0
libtpu: 0.0.40
codegen_flags: <defaults>
</compile_context>

<pallas_src>
import functools

import jax
import jax.numpy as jnp
from jax import lax
from jax.experimental import pallas as pl
from jax.experimental.pallas import tpu as pltpu

BN_EPS = 1e-5


# ---------------------------------------------------------------------------
# Kernel 1: concat-Linear + ReLU + BatchNorm1d (batch stats) + layer-0 LSTM
#           input projection (gates0_pre = bn_x @ Wi0 + (b_ih0 + b_hh0))
# ---------------------------------------------------------------------------
def _embed_kernel(feat_ref, w_ref, b_ref, gamma_ref, beta_ref, wi0_ref, b0_ref,
                  out_ref):
    x = jnp.dot(feat_ref[...], w_ref[...],
                preferred_element_type=jnp.float32) + b_ref[...]
    x = jnp.maximum(x, 0.0)  # ReLU
    # BatchNorm1d (training mode): biased batch statistics over the row dim.
    mean = jnp.mean(x, axis=0, keepdims=True)
    var = jnp.mean((x - mean) ** 2, axis=0, keepdims=True)
    xn = (x - mean) * lax.rsqrt(var + BN_EPS) * gamma_ref[...] + beta_ref[...]
    # Hoisted LSTM layer-0 input projection: one large MXU matmul.
    out_ref[...] = (jnp.dot(xn, wi0_ref[...],
                            preferred_element_type=jnp.float32) + b0_ref[...])


def embed_pallas(feat_cat, w_cat, b_cat, gamma, beta, wi0, b0):
    N = feat_cat.shape[0]
    G = wi0.shape[1]  # 4*H
    return pl.pallas_call(
        _embed_kernel,
        out_shape=jax.ShapeDtypeStruct((N, G), jnp.float32),
    )(feat_cat, w_cat, b_cat, gamma, beta, wi0, b0)


# ---------------------------------------------------------------------------
# Kernel 2: 2-layer LSTM (time-chunked grid, state in VMEM scratch) fused
#           with a per-chunk fc2 + sigmoid epilogue on a lane-dense slab.
# ---------------------------------------------------------------------------
def _lstm_fc2_kernel(H, B_pad, Tc, T, needs_mask,
                     g0_ref, h0_ref, c0_ref,
                     wh0_ref, wi1_ref, wh1_ref, b1_ref,
                     w2_ref, b2_ref,
                     out_ref, hn_ref, cn_ref,
                     h1s, c1s, h2s, c2s, hbuf):
    s = pl.program_id(0)

    @pl.when(s == 0)
    def _():
        h1s[...] = h0_ref[0]
        c1s[...] = c0_ref[0]
        h2s[...] = h0_ref[1]
        c2s[...] = c0_ref[1]

    def gate_math(pre, c_prev):
        i = jax.nn.sigmoid(pre[:, 0 * H:1 * H])
        f = jax.nn.sigmoid(pre[:, 1 * H:2 * H])
        g = jnp.tanh(pre[:, 2 * H:3 * H])
        o = jax.nn.sigmoid(pre[:, 3 * H:4 * H])
        c_new = f * c_prev + i * g
        h_new = o * jnp.tanh(c_new)
        return h_new, c_new

    def step(lt, carry):
        # Layer 0: input projection was precomputed (gates0_pre already holds
        # x @ Wi0 + b0); only the recurrent matmul runs on the serial path.
        pre0 = g0_ref[lt] + jnp.dot(h1s[...], wh0_ref[...],
                                    preferred_element_type=jnp.float32)
        h1, c1 = gate_math(pre0, c1s[...])

        # Layer 1.
        pre1 = (jnp.dot(h1, wi1_ref[...], preferred_element_type=jnp.float32)
                + jnp.dot(h2s[...], wh1_ref[...],
                          preferred_element_type=jnp.float32)
                + b1_ref[...])
        h2, c2 = gate_math(pre1, c2s[...])

        if needs_mask:  # static: only compiled in when Tc does not divide T
            valid = (s * Tc + lt) < T  # keeps h_n / c_n exact on ragged tail
            h1 = jnp.where(valid, h1, h1s[...])
            c1 = jnp.where(valid, c1, c1s[...])
            h2 = jnp.where(valid, h2, h2s[...])
            c2 = jnp.where(valid, c2, c2s[...])

        h1s[...] = h1
        c1s[...] = c1
        h2s[...] = h2
        c2s[...] = c2

        # Stage the layer-2 hidden state; fc2 runs once per chunk below.
        row = pl.multiple_of(lt * B_pad, B_pad)
        hbuf[pl.ds(row, B_pad), :] = h2
        return carry

    if Tc <= 16:
        lax.fori_loop(0, Tc, step, 0, unroll=True)
    else:
        lax.fori_loop(0, Tc, step, 0)

    # Fused fc2 + sigmoid epilogue: ONE big MXU matmul for the whole chunk,
    # lane-dense (O padded to 128) unmasked store.
    y = (jnp.dot(hbuf[...], w2_ref[...], preferred_element_type=jnp.float32)
         + b2_ref[...])
    out_ref[...] = jax.nn.sigmoid(y)

    @pl.when(s == pl.num_programs(0) - 1)
    def _():
        hn_ref[0] = h1s[...]
        hn_ref[1] = h2s[...]
        cn_ref[0] = c1s[...]
        cn_ref[1] = c2s[...]


def lstm_fc2_pallas(gates0_p, h0_p, c0_p, wh0, wi1, wh1, b1, w2_p, b2_p,
                    H, T, Tc):
    T_pad, B_pad, G = gates0_p.shape
    O_pad = w2_p.shape[1]
    n_chunks = T_pad // Tc
    needs_mask = (T_pad != T)
    kernel = functools.partial(_lstm_fc2_kernel, H, B_pad, Tc, T, needs_mask)
    grid_spec = pltpu.PrefetchScalarGridSpec(
        num_scalar_prefetch=0,
        grid=(n_chunks,),
        in_specs=[
            pl.BlockSpec((Tc, B_pad, G), lambda s: (s, 0, 0)),   # gates0_pre chunk
            pl.BlockSpec((2, B_pad, H), lambda s: (0, 0, 0)),    # h0
            pl.BlockSpec((2, B_pad, H), lambda s: (0, 0, 0)),    # c0
            pl.BlockSpec((H, G), lambda s: (0, 0)),              # Wh layer 0
            pl.BlockSpec((H, G), lambda s: (0, 0)),              # Wi layer 1
            pl.BlockSpec((H, G), lambda s: (0, 0)),              # Wh layer 1
            pl.BlockSpec((1, G), lambda s: (0, 0)),              # bias layer 1
            pl.BlockSpec((H, O_pad), lambda s: (0, 0)),          # fc2 weight (padded)
            pl.BlockSpec((1, O_pad), lambda s: (0, 0)),          # fc2 bias (padded)
        ],
        out_specs=[
            pl.BlockSpec((Tc * B_pad, O_pad), lambda s: (s, 0)),  # sigmoid(fc2) slab
            pl.BlockSpec((2, B_pad, H), lambda s: (0, 0, 0)),     # h_n (resident)
            pl.BlockSpec((2, B_pad, H), lambda s: (0, 0, 0)),     # c_n (resident)
        ],
        scratch_shapes=[pltpu.VMEM((B_pad, H), jnp.float32)] * 4
                       + [pltpu.VMEM((Tc * B_pad, H), jnp.float32)],
    )
    return pl.pallas_call(
        kernel,
        out_shape=(
            jax.ShapeDtypeStruct((T_pad * B_pad, O_pad), jnp.float32),
            jax.ShapeDtypeStruct((2, B_pad, H), jnp.float32),
            jax.ShapeDtypeStruct((2, B_pad, H), jnp.float32),
        ),
        grid_spec=grid_spec,
        compiler_params=pltpu.CompilerParams(
            dimension_semantics=("arbitrary",)),
    )(gates0_p, h0_p, c0_p, wh0, wi1, wh1, b1, w2_p, b2_p)


# ---------------------------------------------------------------------------
# Full forward (wrapper: concat/stack, padding, slicing — layout plumbing only)
# ---------------------------------------------------------------------------
def hantman_forward(inputs, hidden, params, time_chunk=128):
    T, B = inputs[0].shape[0], inputs[0].shape[1]
    H = params["gamma"].shape[-1]
    O = params["w2"].shape[1]
    h0, c0 = hidden

    wi0, wh0, b0 = params["lstm"][0]
    wi1, wh1, b1 = params["lstm"][1]

    # --- one contraction instead of n_inputs small ones -----------------------
    feat_cat = jnp.concatenate([f.reshape(-1, f.shape[2]) for f in inputs], axis=-1)
    w_cat = jnp.concatenate([w for (w, _) in params["fcs"]], axis=0)
    b_cat = sum(b for (_, b) in params["fcs"])

    gates0 = embed_pallas(feat_cat, w_cat, b_cat,
                          params["gamma"], params["beta"], wi0, b0)
    gates0 = gates0.reshape(T, B, 4 * H)

    # --- pad batch to full sublane groups, time to chunk multiple -------------
    B_pad = max(8, pl.cdiv(B, 8) * 8)
    Tc = min(time_chunk, T)
    T_pad = pl.cdiv(T, Tc) * Tc

    gates0_p = jnp.zeros((T_pad, B_pad, 4 * H), jnp.float32).at[:T, :B].set(gates0)
    h0_p = jnp.zeros((2, B_pad, H), jnp.float32).at[:, :B].set(h0)
    c0_p = jnp.zeros((2, B_pad, H), jnp.float32).at[:, :B].set(c0)

    # --- lane-dense padding of fc2 so the fused epilogue stores full vregs ----
    O_pad = max(128, pl.cdiv(O, 128) * 128)
    w2_p = jnp.zeros((H, O_pad), jnp.float32).at[:, :O].set(params["w2"])
    b2_p = jnp.zeros((1, O_pad), jnp.float32).at[:, :O].set(params["b2"])

    out2d, hn_p, cn_p = lstm_fc2_pallas(
        gates0_p, h0_p, c0_p, wh0, wi1, wh1, b1, w2_p, b2_p, H, T, Tc)

    out = out2d.reshape(T_pad, B_pad, O_pad)[:T, :B, :O]
    h_n = hn_p[:, :B, :]
    c_n = cn_p[:, :B, :]
    return out, (h_n, c_n)


# ---------------------------------------------------------------------------
# Pure-JAX reference (f32, mirrors PyTorch semantics) for correctness check
# ---------------------------------------------------------------------------
def reference_forward(inputs, hidden, params):
    T, B = inputs[0].shape[0], inputs[0].shape[1]
    H = params["gamma"].shape[-1]
    h0, c0 = hidden

    acc = None
    for feat, (w, b) in zip(inputs, params["fcs"]):
        y = feat.reshape(-1, feat.shape[2]) @ w + b
        acc = y if acc is None else acc + y
    x = jnp.maximum(acc, 0.0)
    mean = jnp.mean(x, axis=0, keepdims=True)
    var = jnp.mean((x - mean) ** 2, axis=0, keepdims=True)
    x = (x - mean) / jnp.sqrt(var + BN_EPS) * params["gamma"] + params["beta"]
    embeds = x.reshape(T, B, H)

    h = [h0[0], h0[1]]
    c = [c0[0], c0[1]]
    outs = []
    for t in range(T):
        inp = embeds[t]
        for l in range(2):
            wi, wh, bias = params["lstm"][l]
            gates = inp @ wi + h[l] @ wh + bias
            i = jax.nn.sigmoid(gates[:, :H])
            f = jax.nn.sigmoid(gates[:, H:2 * H])
            g = jnp.tanh(gates[:, 2 * H:3 * H])
            o = jax.nn.sigmoid(gates[:, 3 * H:4 * H])
            c[l] = f * c[l] + i * g
            h[l] = o * jnp.tanh(c[l])
            inp = h[l]
        outs.append(inp)
    lstm_out = jnp.stack(outs, 0)

    y = lstm_out.reshape(-1, H) @ params["w2"] + params["b2"]
    out = jax.nn.sigmoid(y).reshape(T, B, -1)
    return out, (jnp.stack(h), jnp.stack(c))


# ---------------------------------------------------------------------------
# Deterministic parameter init (synthetic; mimics PyTorch uniform fan-in init)
# ---------------------------------------------------------------------------
def init_params(key, input_dims, hidden_dim, output_dim):
    params = {}
    keys = iter(jax.random.split(key, 64))

    def uni(shape, scale):
        return jax.random.uniform(next(keys), shape, jnp.float32, -scale, scale)

    # fcs: Linear(input_dim -> hidden_dim); stored transposed (in, out)
    fcs = []
    for d in input_dims:
        s = 1.0 / jnp.sqrt(d)
        fcs.append((uni((d, hidden_dim), s), uni((1, hidden_dim), s)))
    params["fcs"] = fcs

    # bn1 affine parameters (training-mode batch statistics)
    params["gamma"] = 1.0 + 0.1 * jax.random.normal(next(keys), (1, hidden_dim), jnp.float32)
    params["beta"] = 0.1 * jax.random.normal(next(keys), (1, hidden_dim), jnp.float32)

    # 2-layer LSTM, gate order (i, f, g, o); weights stored transposed (in, 4H)
    s = 1.0 / jnp.sqrt(hidden_dim)
    lstm = []
    for _ in range(2):
        wi = uni((hidden_dim, 4 * hidden_dim), s)
        wh = uni((hidden_dim, 4 * hidden_dim), s)
        b = uni((1, 4 * hidden_dim), s) + uni((1, 4 * hidden_dim), s)  # b_ih + b_hh
        lstm.append((wi, wh, b))
    params["lstm"] = lstm

    # fc2
    s = 1.0 / jnp.sqrt(hidden_dim)
    params["w2"] = uni((hidden_dim, output_dim), s)
    params["b2"] = uni((1, output_dim), s)
    return params


if __name__ == "__main__":
    key = jax.random.PRNGKey(0)
    input_dims = [32, 16]
    hidden_dim = 32
    output_dim = 6
    T, B = 8, 2

    k_params, k0, k1 = jax.random.split(key, 3)
    params = init_params(k_params, input_dims, hidden_dim, output_dim)

    inputs = [
        jax.random.normal(k0, (T, B, input_dims[0]), jnp.float32),
        jax.random.normal(k1, (T, B, input_dims[1]), jnp.float32),
    ]
    # init_hidden(batch_size): zeros of (n_layers, batch, hidden_dim)
    h0 = jnp.zeros((2, B, hidden_dim), jnp.float32)
    c0 = jnp.zeros((2, B, hidden_dim), jnp.float32)

    out, (h_n, c_n) = hantman_forward(inputs, (h0, c0), params)
    out = jax.block_until_ready(out)
    h_n = jax.block_until_ready(h_n)
    c_n = jax.block_until_ready(c_n)

    ref_out, (ref_h, ref_c) = reference_forward(inputs, (h0, c0), params)
    assert out.shape == (T, B, output_dim)
    assert h_n.shape == (2, B, hidden_dim) and c_n.shape == (2, B, hidden_dim)
    assert jnp.allclose(out, ref_out, atol=1e-4), "output mismatch"
    assert jnp.allclose(h_n, ref_h, atol=1e-4), "h_n mismatch"
    assert jnp.allclose(c_n, ref_c, atol=1e-4), "c_n mismatch"

    print("KERNEL_OK")
</pallas_src>

<mosaic_0001>
module attributes {stable_mosaic.version = 11 : i64} {
  func.func @_embed_kernel(%arg0: memref<16x48xf32, #tpu.memory_space<vmem>>, %arg1: memref<48x32xf32, #tpu.memory_space<vmem>>, %arg2: memref<1x32xf32, #tpu.memory_space<vmem>>, %arg3: memref<1x32xf32, #tpu.memory_space<vmem>>, %arg4: memref<1x32xf32, #tpu.memory_space<vmem>>, %arg5: memref<32x128xf32, #tpu.memory_space<vmem>>, %arg6: memref<1x128xf32, #tpu.memory_space<vmem>>, %arg7: memref<16x128xf32, #tpu.memory_space<vmem>>) attributes {dimension_semantics = [], scalar_prefetch = 0 : i64, scratch_operands = 0 : i64, tpu.core_type = #tpu.core_type<tc>} {
    %c0 = arith.constant 0 : index
    %c0_0 = arith.constant 0 : index
    %0 = vector.load %arg0[%c0, %c0_0] : memref<16x48xf32, #tpu.memory_space<vmem>>, vector<16x48xf32>
    %c0_1 = arith.constant 0 : index
    %c0_2 = arith.constant 0 : index
    %1 = vector.load %arg1[%c0_1, %c0_2] : memref<48x32xf32, #tpu.memory_space<vmem>>, vector<48x32xf32>
    %cst = arith.constant dense<0.000000e+00> : vector<16x32xf32>
    %2 = tpu.matmul %0, %1, %cst {dimension_numbers = #tpu.dot_dimension_numbers<[1], [0], [0], [1], [0, 0, 1, 1], [], []>} : vector<16x48xf32>, vector<48x32xf32>, vector<16x32xf32> -> vector<16x32xf32>
    %c0_3 = arith.constant 0 : index
    %c0_4 = arith.constant 0 : index
    %3 = vector.load %arg2[%c0_3, %c0_4] : memref<1x32xf32, #tpu.memory_space<vmem>>, vector<1x32xf32>
    %4 = vector.broadcast %3 : vector<1x32xf32> to vector<16x32xf32>
    %5 = arith.addf %2, %4 : vector<16x32xf32>
    %cst_5 = arith.constant 0.000000e+00 : f32
    %6 = vector.broadcast %cst_5 : f32 to vector<16x32xf32>
    %7 = arith.maximumf %5, %6 : vector<16x32xf32>
    %cst_6 = arith.constant dense<0.000000e+00> : vector<32xf32>
    %8 = vector.multi_reduction <add>, %7, %cst_6 [0] : vector<16x32xf32> to vector<32xf32>
    %9 = vector.shape_cast %8 : vector<32xf32> to vector<1x32xf32>
    %cst_7 = arith.constant 1.600000e+01 : f32
    %10 = vector.broadcast %cst_7 : f32 to vector<1x32xf32>
    %11 = arith.divf %9, %10 : vector<1x32xf32>
    %12 = vector.broadcast %11 : vector<1x32xf32> to vector<16x32xf32>
    %13 = arith.subf %7, %12 : vector<16x32xf32>
    %14 = arith.mulf %13, %13 : vector<16x32xf32>
    %cst_8 = arith.constant dense<0.000000e+00> : vector<32xf32>
    %15 = vector.multi_reduction <add>, %14, %cst_8 [0] : vector<16x32xf32> to vector<32xf32>
    %16 = vector.shape_cast %15 : vector<32xf32> to vector<1x32xf32>
    %cst_9 = arith.constant 1.600000e+01 : f32
    %17 = vector.broadcast %cst_9 : f32 to vector<1x32xf32>
    %18 = arith.divf %16, %17 : vector<1x32xf32>
    %19 = vector.broadcast %11 : vector<1x32xf32> to vector<16x32xf32>
    %20 = arith.subf %7, %19 : vector<16x32xf32>
    %cst_10 = arith.constant 9.99999974E-6 : f32
    %21 = vector.broadcast %cst_10 : f32 to vector<1x32xf32>
    %22 = arith.addf %18, %21 : vector<1x32xf32>
    %23 = math.rsqrt %22 : vector<1x32xf32>
    %24 = vector.broadcast %23 : vector<1x32xf32> to vector<16x32xf32>
    %25 = arith.mulf %20, %24 : vector<16x32xf32>
    %c0_11 = arith.constant 0 : index
    %c0_12 = arith.constant 0 : index
    %26 = vector.load %arg3[%c0_11, %c0_12] : memref<1x32xf32, #tpu.memory_space<vmem>>, vector<1x32xf32>
    %27 = vector.broadcast %26 : vector<1x32xf32> to vector<16x32xf32>
    %28 = arith.mulf %25, %27 : vector<16x32xf32>
    %c0_13 = arith.constant 0 : index
    %c0_14 = arith.constant 0 : index
    %29 = vector.load %arg4[%c0_13, %c0_14] : memref<1x32xf32, #tpu.memory_space<vmem>>, vector<1x32xf32>
    %30 = vector.broadcast %29 : vector<1x32xf32> to vector<16x32xf32>
    %31 = arith.addf %28, %30 : vector<16x32xf32>
    %c0_15 = arith.constant 0 : index
    %c0_16 = arith.constant 0 : index
    %32 = vector.load %arg5[%c0_15, %c0_16] : memref<32x128xf32, #tpu.memory_space<vmem>>, vector<32x128xf32>
    %cst_17 = arith.constant dense<0.000000e+00> : vector<16x128xf32>
    %33 = tpu.matmul %31, %32, %cst_17 {dimension_numbers = #tpu.dot_dimension_numbers<[1], [0], [0], [1], [0, 0, 1, 1], [], []>} : vector<16x32xf32>, vector<32x128xf32>, vector<16x128xf32> -> vector<16x128xf32>
    %c0_18 = arith.constant 0 : index
    %c0_19 = arith.constant 0 : index
    %34 = vector.load %arg6[%c0_18, %c0_19] : memref<1x128xf32, #tpu.memory_space<vmem>>, vector<1x128xf32>
    %35 = vector.broadcast %34 : vector<1x128xf32> to vector<16x128xf32>
    %36 = arith.addf %33, %35 : vector<16x128xf32>
    %c0_20 = arith.constant 0 : index
    %c0_21 = arith.constant 0 : index
    %37 = vector.load %arg7[%c0_20, %c0_21] : memref<16x128xf32, #tpu.memory_space<vmem>>, vector<16x128xf32>
    tpu.vector_store %arg7[%c0_20, %c0_21], %36 {strides = array<i32>} : memref<16x128xf32, #tpu.memory_space<vmem>>, vector<16x128xf32>,
    return
  }
}

</mosaic_0001>

<bundles_post_ra>
// kernel: tpu_custom_call.1
= control target key start
LH: loop header
LB: loop body
LE: loop exit
PB: predicated region body
PF: predicated region fallthrough
CT: control target
= control target key end

     0   :  { %s338_s0 = inlined_call_operand.vmem [shape: f32[16,48], index: 0, kind: input, shape index: {}]   ;;  %s339_s1 = inlined_call_operand.vmem [shape: f32[48,32], index: 1, kind: input, shape index: {}]   ;;  %s340_s2 = inlined_call_operand.vmem [shape: f32[1,32], index: 2, kind: input, shape index: {}]   ;;  %s341_s3 = inlined_call_operand.vmem [shape: f32[1,32], index: 3, kind: input, shape index: {}]   ;;  %s342_s4 = inlined_call_operand.vmem [shape: f32[1,32], index: 4, kind: input, shape index: {}]   ;;  %s343_s5 = inlined_call_operand.vmem [shape: f32[32,128], index: 5, kind: input, shape index: {}]   ;;  %s344_s6 = inlined_call_operand.vmem [shape: f32[1,128], index: 6, kind: input, shape index: {}]   ;;  %s345_s7 = inlined_call_operand.hbm [shape: f32[16,128], index: 7, kind: output, shape index: {}]  }
   0x1   :  { %v34_v0 = vld [vmem:[%s339_s1 + $0x28] sm:$0xff]  ;;  %v33_v1 = vld [vmem:[%s339_s1 + $0x20] sm:$0xff]  ;;  %v32_v2 = vld [vmem:[%s339_s1 + $0x18] sm:$0xff] }
   0x2   :  { %189 = vmatpush.msra.mxu2 %v34_v0  ;;  %56 = vmatpush.msra.mxu0 %v34_v0  ;;  %v31_v3 = vld [vmem:[%s339_s1 + $0x10] sm:$0xff] }
   0x4   :  { %190 = vmatpush.msra.mxu2 %v33_v1  ;;  %57 = vmatpush.msra.mxu0 %v33_v1 }
   0x5   :  { %12 = vsyncpa [#allocation3], 0  ;;  %v30_v4 = vld [vmem:[%s339_s1 + $0x8] sm:$0xff]  ;;  %v29_v5 = vld [vmem:[%s339_s1] sm:$0xff]  ;;  %vm39_vm0 = vcmask 392192   ;;  %v237_v9 = vmov 16.0  }
   0x6   :  { %191 = vmatpush.msra.mxu2 %v32_v2  ;;  %58 = vmatpush.msra.mxu0 %v32_v2  ;;  %v28_v6 = vld [vmem:[%s338_s0 + $0x8] sm:$0xff]  ;;  %v27_v7 = vld [vmem:[%s338_s0] sm:$0xff]  ;;  %207 = vrcp.f32 %v237_v9  ;;  %vm71_vm1 = vcmask 261120   ;;  %v131_v40 = vld [vmem:[%s343_s5 + $0x18] sm:$0xff]  ;;  %s239_s9 = smov 128   ;;  %s240_s10 = smov 8  }
   0x7   :  { %v203_v8 = vld [vmem:[%s340_s2] ss:$0 sm:$0xff]  ;;  %154 = vmatpush.msra.mxu1 %v131_v40  ;;  %195 = vmatpush.msra.mxu3 %v131_v40  ;;  %v130_v42 = vld [vmem:[%s343_s5 + $0x10] sm:$0xff]  ;;  %v129_v43 = vld [vmem:[%s343_s5 + $0x8] sm:$0xff] }
   0x8   :  { %192 = vmatpush.msra.mxu2 %v31_v3  ;;  %59 = vmatpush.msra.mxu0 %v31_v3  ;;  %v128_v45 = vld [vmem:[%s343_s5] sm:$0xff] }
   0x9   :  { %155 = vmatpush.msra.mxu1 %v130_v42  ;;  %196 = vmatpush.msra.mxu3 %v130_v42  ;;  %v204_v57 = vld [vmem:[%s341_s3] ss:$0 sm:$0xff]  ;;  %s238_s3 = smov [#allocation2]  }
   0xa   :  { %193 = vmatpush.msra.mxu2 %v30_v4  ;;  %60 = vmatpush.msra.mxu0 %v30_v4  ;;  %v205_v61 = vld [vmem:[%s342_s4] ss:$0 sm:$0xff]  ;;  %s171_s29 = sshll.u32 %s238_s3, 4  ;;  %s173_s4 = sshll.u32 %s345_s7, 4  ;;  %s172_s29 = int_to_ptr.vmem [resolvable:$true] %s171_s29  ;;  %s174_s4 = int_to_ptr.hbm [resolvable:$true] %s173_s4 }
   0xb   :  { %156 = vmatpush.msra.mxu1 %v129_v43  ;;  %197 = vmatpush.msra.mxu3 %v129_v43  ;;  %v206_v2 = vld [vmem:[%s344_s6] ss:$0 sm:$0xff] }
   0xc   :  { %194 = vmatpush.msra.mxu2 %v29_v5  ;;  %61 = vmatpush.msra.mxu0 %v29_v5  ;;  %v208_v12 = vpop.eup %207 }
   0xd   :  { %186 = vmatmul.msk.f32.vlgmr.msra.gmra.mxu2 %vm39_vm0, %v28_v6  ;;  %185 = vmatmul.msk.f32.vlgmr.msra.gmra.mxu0 %vm39_vm0, %v27_v7  ;;  %v82_v16 = vmul.f32 16.0, %v208_v12  ;;  %vm86_vm2 = vweird.f32 %v208_v12 }
   0xe   :  { %157 = vmatpush.msra.mxu1 %v128_v45  ;;  %198 = vmatpush.msra.mxu3 %v128_v45 }
   0xf   :  { %v83_v20 = vsub.f32 1.0, %v82_v16 }
  0x11   :  { %v84_v23 = vmul.f32 %v208_v12, %v83_v20 }
  0x13   :  { %v85_v26 = vadd.f32 %v208_v12, %v84_v23 }
  0x15   :  { %v87_v29 = vsel %vm86_vm2, %v208_v12, %v85_v26 }
  0x8a   :  { %v63_v10 = vpop.f32.mrf.mxu0 }
  0x8b   :  { %v64_v11 = vadd.f32 %v203_v8, %v63_v10 }
  0x8d   :  { %v69_v13 = vmax.f32 %v64_v11, 0.0 }
  0x8f   :  { %v72_v17 = vsel %vm71_vm1, %v69_v13, 0.0 }
  0x90   :  { %v66_v14 = vpop.f32.mrf.mxu2 }
  0x91   :  { %v67_v15 = vadd.f32 %v203_v8, %v66_v14 }
  0x93   :  { %v70_v18 = vmax.f32 %v67_v15, 0.0 }
  0x95   :  { %v73_v19 = vsel %vm71_vm1, %v70_v18, 0.0 }
  0x96   :  { %v74_v21 = vadd.f32 %v73_v19, %v72_v17 }
  0x98   :  { %v75_v22 = vrot.slane %v74_v21, 4 }
  0x9a   :  { %v76_v24 = vadd.f32 %v75_v22, %v74_v21 }
  0x9c   :  { %v77_v25 = vrot.slane %v76_v24, 2 }
  0x9e   :  { %v78_v27 = vadd.f32 %v77_v25, %v76_v24 }
  0xa0   :  { %v79_v28 = vrot.slane %v78_v27, 1 }
  0xa2   :  { %v80_v30 = vadd.f32 %v79_v28, %v78_v27 }
  0xa4   :  { %v88_v31 = vmul.f32 %v87_v29, %v80_v30 }
  0xa6   :  { %v89_v32 = vsub.f32 %v69_v13, %v88_v31  ;;  %v90_v33 = vsub.f32 %v70_v18, %v88_v31 }
  0xa8   :  { %v91_v34 = vmul.f32 %v89_v32, %v89_v32  ;;  %v92_v35 = vmul.f32 %v90_v33, %v90_v33 }
  0xaa   :  { %v93_v36 = vsel %vm71_vm1, %v91_v34, 0.0  ;;  %v94_v37 = vsel %vm71_vm1, %v92_v35, 0.0 }
  0xab   :  { %v95_v38 = vadd.f32 %v94_v37, %v93_v36 }
  0xad   :  { %v96_v39 = vrot.slane %v95_v38, 4 }
  0xaf   :  { %v97_v41 = vadd.f32 %v96_v39, %v95_v38 }
  0xb1   :  { %v98_v44 = vrot.slane %v97_v41, 2 }
  0xb3   :  { %v99_v46 = vadd.f32 %v98_v44, %v97_v41 }
  0xb5   :  { %v100_v47 = vrot.slane %v99_v46, 1 }
  0xb7   :  { %v101_v48 = vadd.f32 %v100_v47, %v99_v46 }
  0xb9   :  { %v102_v49 = vmul.f32 %v101_v48, %v87_v29 }
  0xbb   :  { %v103_v50 = vadd.f32 1e-05, %v102_v49 }
  0xbd   :  { %209 = vrsqrt.f32 %v103_v50  ;;  %vm110_vm4 = vweird.f32 %v103_v50 }
  0xc3   :  { %v210_v51 = vpop.eup %209 }
  0xc4   :  { %v105_v52 = vmul.f32 %v210_v51, %v103_v50  ;;  %vm111_vm3 = vweird.f32 %v210_v51 }
  0xc5   :  { %vm112_vm5 = vmor %vm110_vm4, %vm111_vm3 }
  0xc6   :  { %v106_v53 = vmul.f32 %v210_v51, %v105_v52 }
  0xc8   :  { %v107_v54 = vmul.f32 0.5, %v106_v53 }
  0xca   :  { %v108_v55 = vsub.f32 1.5, %v107_v54 }
  0xcc   :  { %v109_v56 = vmul.f32 %v210_v51, %v108_v55 }
  0xce   :  { %v113_v58 = vsel %vm112_vm5, %v210_v51, %v109_v56 }
  0xcf   :  { %v114_v59 = vmul.f32 %v113_v58, %v89_v32  ;;  %v115_v60 = vmul.f32 %v113_v58, %v90_v33 }
  0xd1   :  { %v120_v62 = vmul.f32 %v204_v57, %v114_v59  ;;  %v121_v63 = vmul.f32 %v204_v57, %v115_v60 }
  0xd3   :  { %v126_v0 = vadd.f32 %v205_v61, %v120_v62  ;;  %v127_v1 = vadd.f32 %v205_v61, %v121_v63 }
  0xd5   :  { %187 = vmatmul.msk.f32.vlgmr.msra.gmra.mxu1 %vm71_vm1, %v126_v0  ;;  %188 = vmatmul.msk.f32.vlgmr.msra.gmra.mxu3 %vm71_vm1, %v127_v1 }
 0x152   :  { %v159_v3 = vpop.f32.mrf.mxu1 }
 0x153   :  { %v160_v4 = vadd.f32 %v206_v2, %v159_v3 }
 0x155   :  { %165 = vst [vmem:[#allocation2] sm:$0xff] %v160_v4 }
 0x158   :  { %v162_v5 = vpop.f32.mrf.mxu3 }
 0x159   :  { %v163_v6 = vadd.f32 %v206_v2, %v162_v5 }
 0x15b   :  { %166 = vst [vmem:[#allocation2 + $0x8] sm:$0xff] %v163_v6 }
 0x15c   :  { %179 = dma.vmem_to_hbm [thread:$0]  %s172_s29, 256, %s174_s4, [#allocation3], %s239_s9, %s239_s9, %s240_s10  }
 0x15d   :  { %235 = dma.done.wait [#allocation3], 256  }
 0x15e   :  { %236 = vsyncadd [#allocation3], 4294967040 }
 0x15f   :  { %184 = vsyncpa [#allocation3], 1 }

</bundles_post_ra>
